<compile_context>
chip_gen: v7x
topology: tpu7x:2x2x1
jax: 0.10.0
libtpu: 0.0.40
codegen_flags: <defaults>
</compile_context>

<pallas_src>
import jax
import jax.numpy as jnp
from jax.experimental import pallas as pl
from jax.experimental.pallas import tpu as pltpu


def _round_up(x, m):
    return ((x + m - 1) // m) * m


def _divisor_tiles(total, granularity, max_tile):
    """Descending multiples of `granularity` that divide `total`, <= max_tile."""
    cap = max(granularity, min(total, (max_tile // granularity) * granularity))
    tiles = []
    t = cap
    while t >= granularity:
        if total % t == 0:
            tiles.append(t)
        t -= granularity
    return tiles or [granularity]


def _vmem_budget_bytes():
    """Per-generation VMEM budget, leaving headroom for compiler scratch."""
    cap = 64 << 20  # conservative fallback (v7x-sized VMEM)
    try:
        cap = int(pltpu.get_tpu_info().vmem_capacity_bytes)
    except Exception:
        pass
    # ~80% of physical (=> ~51 MiB on v7x, ~102 MiB on v5e/v6e), never >112 MiB.
    return max(16 << 20, min(int(cap * 0.8), 112 << 20))


# ---------------------------------------------------------------------------
# Kernels
# ---------------------------------------------------------------------------
def _mlp_resident_kernel(x_ref, w1_ref, b1_ref, w2_ref, b2_ref, o_ref):
    """Weights fully resident in VMEM; grid iterates batch tiles only."""
    # fc1: bf16 x bf16 -> f32 on the MXU
    h = jnp.dot(x_ref[...], w1_ref[...], preferred_element_type=jnp.float32)
    h = jnp.maximum(h + b1_ref[...], 0.0)
    # fc2: re-cast so the second GEMM is also bf16 x bf16 (not f32 x bf16)
    out = jnp.dot(h.astype(w2_ref.dtype), w2_ref[...],
                  preferred_element_type=jnp.float32) + b2_ref[...]
    o_ref[...] = out.astype(o_ref.dtype)


def _mlp_chunked_kernel(x_ref, w1_ref, b1_ref, w2_ref, b2_ref, o_ref, acc_ref):
    """Hidden axis tiled (reduction, grid axis 1 last) with f32 accumulator."""
    hi = pl.program_id(1)

    @pl.when(hi == 0)
    def _init():
        # Fold b2 into the accumulator init (removes the epilogue add).
        acc_ref[...] = jnp.broadcast_to(
            b2_ref[...].astype(jnp.float32), acc_ref.shape)

    h = jnp.dot(x_ref[...], w1_ref[...], preferred_element_type=jnp.float32)
    h = jnp.maximum(h + b1_ref[...], 0.0).astype(w2_ref.dtype)
    acc_ref[...] += jnp.dot(h, w2_ref[...], preferred_element_type=jnp.float32)

    @pl.when(hi == pl.num_programs(1) - 1)
    def _fin():
        o_ref[...] = acc_ref[...].astype(o_ref.dtype)


# ---------------------------------------------------------------------------
# Wrapper
# ---------------------------------------------------------------------------
def deep_model_forward(x, w1, b1, w2, b2, *, tb_max=512, th_max=2048,
                       compute_dtype=jnp.bfloat16):
    """x: [B, I]; w1: [I, H]; b1: [H]; w2: [H, O]; b2: [O].

    Returns [B, O] = relu(x @ w1 + b1) @ w2 + b2 (fp32-accumulated).
    """
    B, I = x.shape
    H = w1.shape[1]
    O = w2.shape[1]
    out_dtype = x.dtype

    b1 = jnp.reshape(b1, (1, -1)).astype(jnp.float32)
    b2 = jnp.reshape(b2, (1, -1)).astype(jnp.float32)

    # --- pad to lane/sublane granularity (no over-padding to tile sizes) ----
    I_p = _round_up(I, 128)
    O_p = _round_up(O, 128)
    H_p = _round_up(H, 128)
    B_p = _round_up(B, 8)

    c_isz = jnp.dtype(compute_dtype).itemsize
    o_isz = jnp.dtype(out_dtype).itemsize

    # TODO(synk): in production, pre-pad/cast the weights once outside this call.
    def _pad2(a, r, c, dt):
        a = a.astype(dt)
        if a.shape == (r, c):
            return a
        return jnp.pad(a, ((0, r - a.shape[0]), (0, c - a.shape[1])))

    x_p = _pad2(x, B_p, I_p, compute_dtype)
    w1_p = _pad2(w1, I_p, H_p, compute_dtype)
    w2_p = _pad2(w2, H_p, O_p, compute_dtype)
    b1_p = _pad2(b1, 1, H_p, jnp.float32)
    b2_p = _pad2(b2, 1, O_p, jnp.float32)

    budget = _vmem_budget_bytes()

    # Batch tile candidates: divisors of B_p, and >=2 tiles when B permits so
    # the "parallel" axis can shard across both v7x TensorCores.
    tb_cap = tb_max
    if B_p >= 16:
        tb_cap = min(tb_cap, _round_up(B_p // 2, 8))
    tb_candidates = _divisor_tiles(B_p, 8, tb_cap)

    flops = 2 * B_p * I_p * H_p + 2 * B_p * H_p * O_p
    w_bytes = (I_p * H_p + H_p * O_p) * c_isz + (H_p + O_p) * 4

    # ---------------- fast path: weights fully resident in VMEM -------------
    for TB in tb_candidates:
        need = (w_bytes
                + 2 * TB * I_p * c_isz          # x tile (double buffered)
                + 2 * TB * O_p * o_isz          # out tile (double buffered)
                + TB * H_p * (4 + c_isz))       # f32 hidden + bf16 recast temp
        if need <= budget:
            cost = pl.CostEstimate(
                flops=flops, transcendentals=0,
                bytes_accessed=w_bytes + B_p * I_p * c_isz + B_p * O_p * o_isz)
            out_p = pl.pallas_call(
                _mlp_resident_kernel,
                out_shape=jax.ShapeDtypeStruct((B_p, O_p), out_dtype),
                grid_spec=pltpu.PrefetchScalarGridSpec(
                    num_scalar_prefetch=0,
                    grid=(B_p // TB,),
                    in_specs=[
                        pl.BlockSpec((TB, I_p), lambda i: (i, 0)),    # x
                        pl.BlockSpec((I_p, H_p), lambda i: (0, 0)),   # w1 (resident)
                        pl.BlockSpec((1, H_p), lambda i: (0, 0)),     # b1
                        pl.BlockSpec((H_p, O_p), lambda i: (0, 0)),   # w2 (resident)
                        pl.BlockSpec((1, O_p), lambda i: (0, 0)),     # b2
                    ],
                    out_specs=pl.BlockSpec((TB, O_p), lambda i: (i, 0)),
                ),
                compiler_params=pltpu.CompilerParams(
                    dimension_semantics=("parallel",),
                    vmem_limit_bytes=budget,
                ),
                cost_estimate=cost,
            )(x_p, w1_p, b1_p, w2_p, b2_p)
            return out_p[:B, :O]

    # ------------- chunked path: tile the hidden (reduction) axis -----------
    def _chunk_need(tb, th):
        return (2 * (tb * I_p * c_isz + I_p * th * c_isz + th * 4
                     + th * O_p * c_isz + O_p * 4 + tb * O_p * o_isz)
                + tb * O_p * 4                    # f32 accumulator scratch
                + tb * th * (4 + c_isz))          # f32 hidden + bf16 recast temp

    TB = TH = None
    for tb in tb_candidates:                      # prefer large TB (weight reuse)
        for th in _divisor_tiles(H_p, 128, th_max):
            if _chunk_need(tb, th) <= budget:
                TB, TH = tb, th
                break
        if TB is not None:
            break
    if TB is None:
        TB, TH = tb_candidates[-1], 128           # last-resort smallest tiles

    n_btiles = B_p // TB
    cost = pl.CostEstimate(
        flops=flops, transcendentals=0,
        bytes_accessed=(n_btiles * w_bytes        # weights re-fetched per batch tile
                        + B_p * I_p * c_isz + B_p * O_p * o_isz))

    out_p = pl.pallas_call(
        _mlp_chunked_kernel,
        out_shape=jax.ShapeDtypeStruct((B_p, O_p), out_dtype),
        grid_spec=pltpu.PrefetchScalarGridSpec(
            num_scalar_prefetch=0,
            grid=(n_btiles, H_p // TH),           # batch outer, H reduction last
            in_specs=[
                pl.BlockSpec((TB, I_p), lambda i, h: (i, 0)),   # x
                pl.BlockSpec((I_p, TH), lambda i, h: (0, h)),   # w1 chunk
                pl.BlockSpec((1, TH), lambda i, h: (0, h)),     # b1 chunk
                pl.BlockSpec((TH, O_p), lambda i, h: (h, 0)),   # w2 chunk
                pl.BlockSpec((1, O_p), lambda i, h: (0, 0)),    # b2
            ],
            out_specs=pl.BlockSpec((TB, O_p), lambda i, h: (i, 0)),
            scratch_shapes=[pltpu.VMEM((TB, O_p), jnp.float32)],
        ),
        compiler_params=pltpu.CompilerParams(
            dimension_semantics=("parallel", "arbitrary"),
            vmem_limit_bytes=budget,
        ),
        cost_estimate=cost,
    )(x_p, w1_p, b1_p, w2_p, b2_p)

    return out_p[:B, :O]


if __name__ == "__main__":
    # Small shapes consistent with DeepModel(input_size, hidden_size, output_size)
    batch, input_size, hidden_size, output_size = 8, 32, 64, 16

    key = jax.random.PRNGKey(0)
    kx, kw1, kb1, kw2, kb2 = jax.random.split(key, 5)

    x = jax.random.normal(kx, (batch, input_size), dtype=jnp.float32)

    # Deterministic parameter init (mimics nn.Linear's uniform(-1/sqrt(fan_in), ...))
    lim1 = 1.0 / (input_size ** 0.5)
    w1 = jax.random.uniform(kw1, (input_size, hidden_size), jnp.float32, -lim1, lim1)
    b1 = jax.random.uniform(kb1, (hidden_size,), jnp.float32, -lim1, lim1)
    lim2 = 1.0 / (hidden_size ** 0.5)
    w2 = jax.random.uniform(kw2, (hidden_size, output_size), jnp.float32, -lim2, lim2)
    b2 = jax.random.uniform(kb2, (output_size,), jnp.float32, -lim2, lim2)

    out = deep_model_forward(x, w1, b1, w2, b2)
    jax.block_until_ready(out)

    # Reference check in plain JAX (f32); kernel uses bf16 GEMM inputs with f32
    # accumulation, so the tolerance is loosened accordingly.
    ref = jnp.maximum(x @ w1 + b1[None, :], 0.0) @ w2 + b2[None, :]
    assert out.shape == (batch, output_size)
    assert jnp.allclose(out, ref, atol=3e-2, rtol=3e-2), (
        float(jnp.max(jnp.abs(out - ref))))

    print("KERNEL_OK")
</pallas_src>

<mosaic_0001>
module attributes {stable_mosaic.version = 11 : i64} {
  func.func @_mlp_resident_kernel(%arg0: i32, %arg1: memref<8x128xbf16, #tpu.memory_space<vmem>>, %arg2: memref<128x128xbf16, #tpu.memory_space<vmem>>, %arg3: memref<1x128xf32, #tpu.memory_space<vmem>>, %arg4: memref<128x128xbf16, #tpu.memory_space<vmem>>, %arg5: memref<1x128xf32, #tpu.memory_space<vmem>>, %arg6: memref<8x128xf32, #tpu.memory_space<vmem>>) attributes {dimension_semantics = [#tpu.dimension_semantics<parallel>], iteration_bounds = array<i64: 1>, scalar_prefetch = 0 : i64, scratch_operands = 0 : i64, tpu.core_type = #tpu.core_type<tc>, window_params = [{transform_indices = @transform_0, window_bounds = array<i64: 8, 128>}, {pipeline_mode = #tpu.pipeline_mode<synchronous>, transform_indices = @transform_1, window_bounds = array<i64: 128, 128>}, {pipeline_mode = #tpu.pipeline_mode<synchronous>, transform_indices = @transform_2, window_bounds = array<i64: 1, 128>}, {pipeline_mode = #tpu.pipeline_mode<synchronous>, transform_indices = @transform_3, window_bounds = array<i64: 128, 128>}, {pipeline_mode = #tpu.pipeline_mode<synchronous>, transform_indices = @transform_4, window_bounds = array<i64: 1, 128>}, {transform_indices = @transform_5, window_bounds = array<i64: 8, 128>}]} {
    %c0 = arith.constant 0 : index
    %c0_0 = arith.constant 0 : index
    %0 = vector.load %arg1[%c0, %c0_0] : memref<8x128xbf16, #tpu.memory_space<vmem>>, vector<8x128xbf16>
    %c0_1 = arith.constant 0 : index
    %c0_2 = arith.constant 0 : index
    %1 = vector.load %arg2[%c0_1, %c0_2] : memref<128x128xbf16, #tpu.memory_space<vmem>>, vector<128x128xbf16>
    %cst = arith.constant dense<0.000000e+00> : vector<8x128xf32>
    %2 = tpu.matmul %0, %1, %cst {dimension_numbers = #tpu.dot_dimension_numbers<[1], [0], [0], [1], [0, 0, 1, 1], [], []>} : vector<8x128xbf16>, vector<128x128xbf16>, vector<8x128xf32> -> vector<8x128xf32>
    %c0_3 = arith.constant 0 : index
    %c0_4 = arith.constant 0 : index
    %3 = vector.load %arg3[%c0_3, %c0_4] : memref<1x128xf32, #tpu.memory_space<vmem>>, vector<1x128xf32>
    %4 = vector.broadcast %3 : vector<1x128xf32> to vector<8x128xf32>
    %5 = arith.addf %2, %4 : vector<8x128xf32>
    %cst_5 = arith.constant 0.000000e+00 : f32
    %6 = vector.broadcast %cst_5 : f32 to vector<8x128xf32>
    %7 = arith.maximumf %5, %6 : vector<8x128xf32>
    %8 = arith.truncf %7 : vector<8x128xf32> to vector<8x128xbf16>
    %c0_6 = arith.constant 0 : index
    %c0_7 = arith.constant 0 : index
    %9 = vector.load %arg4[%c0_6, %c0_7] : memref<128x128xbf16, #tpu.memory_space<vmem>>, vector<128x128xbf16>
    %cst_8 = arith.constant dense<0.000000e+00> : vector<8x128xf32>
    %10 = tpu.matmul %8, %9, %cst_8 {dimension_numbers = #tpu.dot_dimension_numbers<[1], [0], [0], [1], [0, 0, 1, 1], [], []>} : vector<8x128xbf16>, vector<128x128xbf16>, vector<8x128xf32> -> vector<8x128xf32>
    %c0_9 = arith.constant 0 : index
    %c0_10 = arith.constant 0 : index
    %11 = vector.load %arg5[%c0_9, %c0_10] : memref<1x128xf32, #tpu.memory_space<vmem>>, vector<1x128xf32>
    %12 = vector.broadcast %11 : vector<1x128xf32> to vector<8x128xf32>
    %13 = arith.addf %10, %12 : vector<8x128xf32>
    %c0_11 = arith.constant 0 : index
    %c0_12 = arith.constant 0 : index
    %14 = vector.load %arg6[%c0_11, %c0_12] : memref<8x128xf32, #tpu.memory_space<vmem>>, vector<8x128xf32>
    tpu.vector_store %arg6[%c0_11, %c0_12], %13 {strides = array<i32>} : memref<8x128xf32, #tpu.memory_space<vmem>>, vector<8x128xf32>,
    return
  }
  func.func @transform_0(%arg0: i32) -> (i32, i32) {
    %c0_i32 = arith.constant 0 : i32
    %c0_i32_0 = arith.constant 0 : i32
    return %arg0, %c0_i32 : i32, i32
  }
  func.func @transform_1(%arg0: i32) -> (i32, i32) {
    %c0_i32 = arith.constant 0 : i32
    %c0_i32_0 = arith.constant 0 : i32
    %c0_i32_1 = arith.constant 0 : i32
    return %c0_i32, %c0_i32_0 : i32, i32
  }
  func.func @transform_2(%arg0: i32) -> (i32, i32) {
    %c0_i32 = arith.constant 0 : i32
    %c0_i32_0 = arith.constant 0 : i32
    %c0_i32_1 = arith.constant 0 : i32
    return %c0_i32, %c0_i32_0 : i32, i32
  }
  func.func @transform_3(%arg0: i32) -> (i32, i32) {
    %c0_i32 = arith.constant 0 : i32
    %c0_i32_0 = arith.constant 0 : i32
    %c0_i32_1 = arith.constant 0 : i32
    return %c0_i32, %c0_i32_0 : i32, i32
  }
  func.func @transform_4(%arg0: i32) -> (i32, i32) {
    %c0_i32 = arith.constant 0 : i32
    %c0_i32_0 = arith.constant 0 : i32
    %c0_i32_1 = arith.constant 0 : i32
    return %c0_i32, %c0_i32_0 : i32, i32
  }
  func.func @transform_5(%arg0: i32) -> (i32, i32) {
    %c0_i32 = arith.constant 0 : i32
    %c0_i32_0 = arith.constant 0 : i32
    return %arg0, %c0_i32 : i32, i32
  }
}

</mosaic_0001>

<bundles_post_ra>
// kernel: tpu_custom_call.1
= control target key start
LH: loop header
LB: loop body
LE: loop exit
PB: predicated region body
PF: predicated region fallthrough
CT: control target
= control target key end

     0   :  { %10 = vsyncpa [#allocation3], 0  ;;  %s595_s0 = inlined_call_operand.hbm [shape: bf16[8,128], index: 0, kind: input, shape index: {}]   ;;  %s596_s1 = inlined_call_operand.hbm [shape: bf16[128,128], index: 1, kind: input, shape index: {}]   ;;  %s597_s2 = inlined_call_operand.vmem [shape: f32[1,128], index: 2, kind: input, shape index: {}]   ;;  %s598_s3 = inlined_call_operand.hbm [shape: bf16[128,128], index: 3, kind: input, shape index: {}]   ;;  %s599_s4 = inlined_call_operand.vmem [shape: f32[1,128], index: 4, kind: input, shape index: {}]   ;;  %s600_s5 = inlined_call_operand.hbm [shape: f32[8,128], index: 5, kind: output, shape index: {}]  }
   0x1   :  { %11 = vsyncpa [#allocation6], 0 }
   0x2   :  { %12 = vsyncpa [#allocation4], 0  ;;  %s497_s18 = smov [#allocation5]   ;;  %s403_s22 = scalar_lea.hbm %s596_s1, 1024 }
   0x3   :  { %s28_s19 = sshll.u32 %s497_s18, 4  ;;  %p404_p0 = scmp.ne.s32.totalorder %s596_s1, %s403_s22  ;;  %s29_s19 = int_to_ptr.vmem [resolvable:$true] %s28_s19 }
   0x4   :  { %p407_p1 = scmp.lt.u32.totalorder %s403_s22, %s596_s1 }
   0x6   :  { %p409_p2 = pnand %p407_p1, %p404_p0 }
   0x8   :  { %412 = shalt.err (!%p409_p2)
}
   0x9   :  { %s413_s27 = scalar_lea.vmem %s29_s19, 1024  ;;  %p418_p4 = scmp.lt.s32.totalorder %s29_s19, %s29_s19 }
   0xa   :  { %p414_p3 = scmp.ne.s32.totalorder %s29_s19, %s413_s27  ;;  %p419_p5 = scmp.lt.s32.totalorder %s413_s27, %s413_s27 }
   0xc   :  { %p420_p6 = por %p419_p5, %p418_p4 }
   0xe   :  { %p421_p7 = pnand %p420_p6, %p414_p3 }
  0x10   :  { %424 = shalt.err (!%p421_p7)
}
  0x11   :  { %s498_s28 = smov 64   ;;  %s499_s29 = smov 4  }
  0x12   :  { %34 = dma.hbm_to_vmem [thread:$0]  %s596_s1, 1024, %s29_s19, [#allocation6], %s498_s28, %s498_s28, %s499_s29  }
  0x13   :  { %s500_s7 = smov [#allocation2]   ;;  %s501_s9 = smov [#allocation7]  }
  0x14   :  { %s19_s8 = sshll.u32 %s500_s7, 4  ;;  %s42_s10 = sshll.u32 %s501_s9, 4  ;;  %s20_s8 = int_to_ptr.vmem [resolvable:$true] %s19_s8  ;;  %s43_s10 = int_to_ptr.vmem [resolvable:$true] %s42_s10 }
  0x15   :  { %s425_s13 = scalar_lea.hbm %s595_s0, 64 }
  0x16   :  { %p426_p8 = scmp.ne.s32.totalorder %s595_s0, %s425_s13  ;;  %p429_p9 = scmp.lt.u32.totalorder %s425_s13, %s595_s0 }
  0x18   :  { %p431_p10 = pnand %p429_p9, %p426_p8 }
  0x1a   :  { %434 = shalt.err (!%p431_p10)
}
  0x1b   :  { %s435_s1 = scalar_lea.vmem %s20_s8, 64  ;;  %p440_p12 = scmp.lt.s32.totalorder %s20_s8, %s20_s8 }
  0x1c   :  { %p436_p11 = scmp.ne.s32.totalorder %s20_s8, %s435_s1  ;;  %p441_p13 = scmp.lt.s32.totalorder %s435_s1, %s435_s1 }
  0x1e   :  { %p442_p0 = por %p441_p13, %p440_p12 }
  0x20   :  { %p443_p1 = pnand %p442_p0, %p436_p11 }
  0x22   :  { %446 = shalt.err (!%p443_p1)
}
  0x23   :  { %22 = dma.hbm_to_vmem [thread:$0]  %s595_s0, 64, %s20_s8, [#allocation3]  }
  0x24   :  { %s447_s22 = scalar_lea.hbm %s598_s3, 1024 }
  0x25   :  { %p448_p2 = scmp.ne.s32.totalorder %s598_s3, %s447_s22  ;;  %p451_p3 = scmp.lt.u32.totalorder %s447_s22, %s598_s3 }
  0x27   :  { %p453_p4 = pnand %p451_p3, %p448_p2 }
  0x29   :  { %456 = shalt.err (!%p453_p4)
}
  0x2a   :  { %s457_s27 = scalar_lea.vmem %s43_s10, 1024  ;;  %p462_p6 = scmp.lt.s32.totalorder %s43_s10, %s43_s10 }
  0x2b   :  { %p458_p5 = scmp.ne.s32.totalorder %s43_s10, %s457_s27  ;;  %p463_p7 = scmp.lt.s32.totalorder %s457_s27, %s457_s27 }
  0x2d   :  { %p464_p8 = por %p463_p7, %p462_p6 }
  0x2f   :  { %p465_p9 = pnand %p464_p8, %p458_p5 }
  0x31   :  { %468 = shalt.err (!%p465_p9)
}
  0x32   :  { %48 = dma.hbm_to_vmem [thread:$0]  %s598_s3, 1024, %s43_s10, [#allocation6], %s498_s28, %s498_s28, %s499_s29  }
  0x33   :  { %491 = dma.done.wait [#allocation3], 64  }
  0x34   :  { %492 = vsyncadd [#allocation3], 4294967232 }
  0x35   :  { %493 = dma.done.wait [#allocation6], 2048  }
  0x36   :  { %494 = vsyncadd [#allocation6], 4294965248  ;;  %v502_v0 = vmov 0.0   ;;  %vm503_vm0 = vmmov 0   ;;  %v387_v1 = vld [vmem:[#allocation5] sm:$0xff]   ;;  %v388_v2 = vld [vmem:[#allocation5 + $0x8] sm:$0xff]  }
  0x37   :  { %339 = vmatprep.subr.bf16.mxu0 %v502_v0  ;;  %355 = vmatprep.mubr.msk.bf16.mxu0 %vm503_vm0, %v502_v0  ;;  %v389_v3 = vld [vmem:[#allocation5 + $0x10] sm:$0xff]   ;;  %v395_v4 = vld [vmem:[#allocation7] sm:$0xff]   ;;  %v390_v5 = vld [vmem:[#allocation5 + $0x18] sm:$0xff]   ;;  %s504_s7 = smov [#allocation8]  }
  0x38   :  { %359 = vmatprep.subr.bf16.mxu1 %v502_v0  ;;  %375 = vmatprep.mubr.msk.bf16.mxu1 %vm503_vm0, %v502_v0  ;;  %v396_v6 = vld [vmem:[#allocation7 + $0x8] sm:$0xff]   ;;  %v391_v7 = vld [vmem:[#allocation5 + $0x20] sm:$0xff]   ;;  %v397_v8 = vld [vmem:[#allocation7 + $0x10] sm:$0xff]   ;;  %s293_s8 = sshll.u32 %s504_s7, 4  ;;  %s294_s8 = int_to_ptr.vmem [resolvable:$true] %s293_s8 }
  0x39   :  { %340 = vmatpush3.bf16.msra.mxu0 %v387_v1  ;;  %360 = vmatpush3.bf16.msra.mxu1 %v395_v4  ;;  %v392_v9 = vld [vmem:[#allocation5 + $0x28] sm:$0xff]   ;;  %v398_v10 = vld [vmem:[#allocation7 + $0x18] sm:$0xff]   ;;  %v393_v11 = vld [vmem:[#allocation5 + $0x30] sm:$0xff]   ;;  %p474_p11 = scmp.lt.s32.totalorder %s294_s8, %s294_s8 }
  0x3a   :  { %341 = vmatprep.subr.bf16.mxu0 %v502_v0  ;;  %361 = vmatprep.subr.bf16.mxu1 %v502_v0  ;;  %v399_v12 = vld [vmem:[#allocation7 + $0x20] sm:$0xff]   ;;  %v394_v13 = vld [vmem:[#allocation5 + $0x38] sm:$0xff]   ;;  %v400_v14 = vld [vmem:[#allocation7 + $0x28] sm:$0xff]  }
  0x3b   :  { %v61_v15 = vld [vmem:[#allocation2] sm:$0xf]  ;;  %v401_v16 = vld [vmem:[#allocation7 + $0x30] sm:$0xff]  }
  0x3c   :  { %v402_v17 = vld [vmem:[#allocation7 + $0x38] sm:$0xff]  }
  0x3d   :  { %342 = vmatpush3.bf16.msra.mxu0 %v388_v2  ;;  %362 = vmatpush3.bf16.msra.mxu1 %v396_v6  ;;  %v303_v18 = vld [vmem:[%s597_s2] ss:$0 sm:$0xff]  ;;  %s469_s2 = scalar_lea.vmem %s294_s8, 128 }
  0x3e   :  { %343 = vmatprep.subr.bf16.mxu0 %v502_v0  ;;  %363 = vmatprep.subr.bf16.mxu1 %v502_v0  ;;  %v312_v26 = vld [vmem:[%s599_s4] ss:$0 sm:$0xff]  ;;  %p470_p10 = scmp.ne.s32.totalorder %s294_s8, %s469_s2  ;;  %p475_p12 = scmp.lt.s32.totalorder %s469_s2, %s469_s2 }
  0x40   :  { %p476_p13 = por %p475_p12, %p474_p11 }
  0x41   :  { %344 = vmatpush3.bf16.msra.mxu0 %v389_v3  ;;  %364 = vmatpush3.bf16.msra.mxu1 %v397_v8 }
  0x42   :  { %345 = vmatprep.subr.bf16.mxu0 %v502_v0  ;;  %365 = vmatprep.subr.bf16.mxu1 %v502_v0  ;;  %p477_p0 = pnand %p476_p13, %p470_p10 }
  0x45   :  { %346 = vmatpush3.bf16.msra.mxu0 %v390_v5  ;;  %366 = vmatpush3.bf16.msra.mxu1 %v398_v10 }
  0x46   :  { %347 = vmatprep.subr.bf16.mxu0 %v502_v0  ;;  %367 = vmatprep.subr.bf16.mxu1 %v502_v0 }
  0x49   :  { %348 = vmatpush3.bf16.msra.mxu0 %v391_v7  ;;  %368 = vmatpush3.bf16.msra.mxu1 %v399_v12 }
  0x4a   :  { %349 = vmatprep.subr.bf16.mxu0 %v502_v0  ;;  %369 = vmatprep.subr.bf16.mxu1 %v502_v0 }
  0x4d   :  { %350 = vmatpush3.bf16.msra.mxu0 %v392_v9  ;;  %370 = vmatpush3.bf16.msra.mxu1 %v400_v14 }
  0x4e   :  { %351 = vmatprep.subr.bf16.mxu0 %v502_v0  ;;  %371 = vmatprep.subr.bf16.mxu1 %v502_v0 }
  0x51   :  { %352 = vmatpush3.bf16.msra.mxu0 %v393_v11  ;;  %372 = vmatpush3.bf16.msra.mxu1 %v401_v16 }
  0x52   :  { %353 = vmatprep.subr.bf16.mxu0 %v502_v0  ;;  %373 = vmatprep.subr.bf16.mxu1 %v502_v0 }
  0x55   :  { %354 = vmatpush3.bf16.msra.mxu0 %v394_v13  ;;  %374 = vmatpush3.bf16.msra.mxu1 %v402_v17 }
  0x58   :  { %356 = vmatmul.mubr.bf16.vlgmr.msra.gmra.mrb[0].mxu0 %v61_v15 }
 0x12b   :  { %v167_v19 = vpop.f32.mrb[0].mxu0 }
 0x12c   :  { %v168_v20 = vadd.f32 %v303_v18, %v167_v19  ;;  %v357_v21 = vpop.f32.mrb[1].mxu0 }
 0x12d   :  { %v170_v22 = vpop.f32.mrb[2].mxu0 }
 0x12e   :  { %v173_v23 = vmax.f32 %v168_v20, 0.0  ;;  %v358_v24 = vpop.f32.mrb[3].mxu0 }
 0x130   :  { %v174_v25 = vpack.c.bf16 %v173_v23, %v173_v23 }
 0x132   :  { %376 = vmatmul.mubr.bf16.vlgmr.msra.gmra.mrb[0].mxu1 %v174_v25 }
 0x205   :  { %v280_v27 = vpop.f32.mrb[0].mxu1 }
 0x206   :  { %v281_v28 = vadd.f32 %v312_v26, %v280_v27  ;;  %v377_v29 = vpop.f32.mrb[1].mxu1 }
 0x207   :  { %v283_v30 = vpop.f32.mrb[2].mxu1 }
 0x208   :  { %286 = vst [vmem:[#allocation8] sm:$0xff] %v281_v28  ;;  %v378_v31 = vpop.f32.mrb[3].mxu1 }
 0x209   :  { %480 = shalt.err (!%p477_p0)
}
 0x20a   :  { %s481_s4 = scalar_lea.hbm %s600_s5, 128 }
 0x20b   :  { %p482_p1 = scmp.ne.s32.totalorder %s600_s5, %s481_s4  ;;  %p485_p2 = scmp.lt.u32.totalorder %s481_s4, %s600_s5 }
 0x20d   :  { %p487_p3 = pnand %p485_p2, %p482_p1 }
 0x20f   :  { %490 = shalt.err (!%p487_p3)
}
 0x210   :  { %296 = dma.vmem_to_hbm [thread:$0]  %s294_s8, 128, %s600_s5, [#allocation4]  }
 0x211   :  { %495 = dma.done.wait [#allocation4], 128  }
 0x212   :  { %496 = vsyncadd [#allocation4], 4294967168 }
 0x213   :  { %300 = vsyncpa [#allocation3], 1 }
 0x214   :  { %301 = vsyncpa [#allocation6], 1 }
 0x215   :  { %302 = vsyncpa [#allocation4], 1 }

</bundles_post_ra>
